<compile_context>
chip_gen: v5e
topology: v5e:2x2
jax: 0.10.0
libtpu: 0.0.40
codegen_flags: <defaults>
</compile_context>

<pallas_src>
import math

import jax
import jax.numpy as jnp
from jax.experimental import pallas as pl
from jax.experimental.pallas import tpu as pltpu


def _round_up(a: int, m: int) -> int:
    return (a + m - 1) // m * m


def _default_tiles():
    """Generation-aware (tm, tn, tk) defaults."""
    kind = ""
    try:
        kind = jax.devices()[0].device_kind.lower()
    except Exception:  # defensive: interpret mode / unusual backends
        pass
    if "v6" in kind:
        # v6e: 918 TF/s vs ~1.4 TB/s -> needs ~683 FLOP/B tiles; ~40 MiB VMEM.
        return 1024, 2048, 1024
    # v5e / v7x / fallback: 512x1024 (~341 FLOP/B) fits v7x's 64 MiB VMEM and
    # clears the v5e (~240) and v7x (~311) ridges.
    return 512, 1024, 512


_SINGLE_K_MAX = 2048  # max padded in_channels for the single-K fast path


def _select_tiles(out_c: int, in_c: int):
    """(tm_default, tn, tk) as a function of the layer shape only (not of n),
    so the weight can be padded/transposed/cast once and reused."""
    tm_def, tn_def, tk_def = _default_tiles()
    out_rnd = _round_up(out_c, 128)
    in_rnd = _round_up(in_c, 128)
    tn = min(tn_def, out_rnd)
    # Single K step whenever the whole (padded) reduction fits one tile.
    tk = in_rnd if in_rnd <= _SINGLE_K_MAX else min(tk_def, in_rnd)
    return tm_def, tn, tk


def prepare_params(weight, bias=None, *, use_bf16=True):
    """One-time weight/bias prep (hoist out of the per-call hot path).

    Pads to the tile grid, transposes to [in, out] (so the kernel contracts
    with a plain jnp.dot, no per-tile RHS transpose) and casts to the MXU feed
    dtype.
    """
    out_c, in_c = weight.shape
    _, tn, tk = _select_tiles(out_c, in_c)
    out_pad = _round_up(out_c, tn)
    in_pad = _round_up(in_c, tk)
    mxu_dtype = jnp.bfloat16 if use_bf16 else weight.dtype
    w_p = jnp.pad(weight, ((0, out_pad - out_c), (0, in_pad - in_c)))
    w_p = jnp.transpose(w_p).astype(mxu_dtype)            # [in_pad, out_pad]
    if bias is None:
        b_p = jnp.zeros((1, out_pad), jnp.float32)
    else:
        b_p = jnp.pad(bias.astype(jnp.float32), (0, out_pad - out_c))
        b_p = b_p.reshape(1, out_pad)
    return w_p, b_p


def _linear_kernel_single_k(x_ref, w_ref, b_ref, o_ref):
    """One (tm, tn) output tile; the whole K reduction in one step.

    x_ref: (tm, tk)  activations (MXU dtype)
    w_ref: (tk, tn)  weight tile, already [in, out]
    b_ref: (1, tn)   bias (f32)
    o_ref: (tm, tn)  output tile
    """
    acc = jnp.dot(x_ref[...], w_ref[...], preferred_element_type=jnp.float32)
    o_ref[...] = (acc + b_ref[...]).astype(o_ref.dtype)


def _linear_kernel_multi_k(x_ref, w_ref, b_ref, o_ref, acc_ref):
    """One (tm, tn) output tile; reduction over K tiles (grid axis 2)."""
    k = pl.program_id(2)

    @pl.when(k == 0)
    def _():
        # Seed the accumulator with the bias -> no epilogue add.
        acc_ref[...] = jnp.broadcast_to(b_ref[...], acc_ref.shape)

    acc_ref[...] += jnp.dot(x_ref[...], w_ref[...],
                            preferred_element_type=jnp.float32)

    @pl.when(k == pl.num_programs(2) - 1)
    def _():
        o_ref[...] = acc_ref[...].astype(o_ref.dtype)


def mean2_linear(x, weight, bias=None, *, use_bf16=True, prepared=None):
    """y = x @ weight.T + bias  (F.linear semantics of Mean2_Linear.forward).

    x:        [..., in_channels]
    weight:   [out_channels, in_channels]   (PyTorch layout)
    bias:     [out_channels] or None
    use_bf16: bf16 MXU feed with f32 accumulation (fast; numerics differ
              slightly from the f32 PyTorch forward). use_bf16=False keeps the
              f32 feed for exact-parity callers.
    prepared: optional (w_p, b_p) from prepare_params(...) -- hoists the
              per-call weight pad/transpose/cast (pure extra HBM traffic on a
              memory-bound op) out of the hot path.
    """
    *lead, in_c = x.shape
    out_c, in_c_w = weight.shape
    assert in_c == in_c_w, (in_c, in_c_w)

    if prepared is None:
        prepared = prepare_params(weight, bias, use_bf16=use_bf16)
    w_p, b_p = prepared
    in_pad, out_pad = w_p.shape
    mxu_dtype = w_p.dtype
    out_dtype = x.dtype

    x2 = x.reshape(-1, in_c)
    n = x2.shape[0]

    tm_def, tn, tk = _select_tiles(out_c, in_c)
    row_align = 16 if mxu_dtype == jnp.bfloat16 else 8   # bf16 packs 16 rows/vreg
    tm = min(tm_def, _round_up(n, row_align))
    n_pad = _round_up(n, tm)

    # Megacore (v7x): keep >= 2 parallel (M, N) tiles on big problems so both
    # TensorCores get work; prefer splitting N (out_pad stays a multiple of
    # tn // 2), fall back to splitting M.
    if (n_pad // tm) * (out_pad // tn) == 1 and tm * tn >= 512 * 512:
        if tn >= 256:
            tn //= 2
        elif tm >= 2 * row_align:
            tm //= 2

    x_p = jnp.pad(x2, ((0, n_pad - n), (0, in_pad - in_c))).astype(mxu_dtype)

    grid_m = n_pad // tm
    grid_n = out_pad // tn
    grid_k = in_pad // tk
    single_k = grid_k == 1

    # --- VMEM footprint of the chosen tiles (double-buffered in/out) --------
    elt_in = jnp.dtype(mxu_dtype).itemsize
    elt_out = jnp.dtype(out_dtype).itemsize
    vmem_bytes = (2 * tm * tk * elt_in        # x tiles
                  + 2 * tk * tn * elt_in      # w tiles
                  + 2 * tn * 4                # bias tile
                  + 2 * tm * tn * elt_out)    # out tiles
    if not single_k:
        vmem_bytes += tm * tn * 4             # f32 accumulator scratch
    vmem_limit = int(min(max(vmem_bytes * 3 // 2 + (2 << 20), 32 << 20),
                         100 << 20))

    # Bytes actually streamed from HBM (x re-read per N tile, w per M tile).
    bytes_accessed = int(x_p.size * elt_in * grid_n
                         + w_p.size * elt_in * grid_m
                         + b_p.size * 4 * grid_m
                         + n_pad * out_pad * elt_out)
    cost = pl.CostEstimate(flops=2 * n_pad * out_pad * in_pad,
                           transcendentals=0,
                           bytes_accessed=bytes_accessed)

    if single_k:
        grid_spec = pltpu.PrefetchScalarGridSpec(
            num_scalar_prefetch=0,
            grid=(grid_m, grid_n),
            in_specs=[
                pl.BlockSpec((tm, tk), lambda i, j: (i, 0)),    # x
                pl.BlockSpec((tk, tn), lambda i, j: (0, j)),    # w [in, out]
                pl.BlockSpec((1, tn), lambda i, j: (0, j)),     # bias
            ],
            out_specs=pl.BlockSpec((tm, tn), lambda i, j: (i, j)),
        )
        kernel = _linear_kernel_single_k
        dim_sem = ("parallel", "parallel")
    else:
        grid_spec = pltpu.PrefetchScalarGridSpec(
            num_scalar_prefetch=0,
            grid=(grid_m, grid_n, grid_k),
            in_specs=[
                pl.BlockSpec((tm, tk), lambda i, j, k: (i, k)),   # x
                pl.BlockSpec((tk, tn), lambda i, j, k: (k, j)),   # w [in, out]
                pl.BlockSpec((1, tn), lambda i, j, k: (0, j)),    # bias
            ],
            out_specs=pl.BlockSpec((tm, tn), lambda i, j, k: (i, j)),
            scratch_shapes=[pltpu.VMEM((tm, tn), jnp.float32)],
        )
        kernel = _linear_kernel_multi_k
        dim_sem = ("parallel", "parallel", "arbitrary")

    y_pad = pl.pallas_call(
        kernel,
        out_shape=jax.ShapeDtypeStruct((n_pad, out_pad), out_dtype),
        grid_spec=grid_spec,
        compiler_params=pltpu.CompilerParams(
            dimension_semantics=dim_sem,
            vmem_limit_bytes=vmem_limit),
        cost_estimate=cost,
    )(x_p, w_p, b_p)

    y = y_pad[:n, :out_c]
    return y.reshape(*lead, out_c)


def init_params(key, in_channels, out_channels):
    """Matches the module defaults:
       weight: kaiming_uniform(fan=in_channels, a=sqrt(5)) -> U(-1/sqrt(in), 1/sqrt(in))
       bias:   inits.uniform(in_channels, bias)            -> U(-1/sqrt(in), 1/sqrt(in))
    """
    kw, kb = jax.random.split(key)
    bound = 1.0 / math.sqrt(in_channels)
    weight = jax.random.uniform(
        kw, (out_channels, in_channels), jnp.float32, -bound, bound)
    bias = jax.random.uniform(
        kb, (out_channels,), jnp.float32, -bound, bound)
    return weight, bias


if __name__ == "__main__":
    key = jax.random.PRNGKey(0)
    kx, kp = jax.random.split(key)

    # Small shapes consistent with the module (graph nodes x features).
    N, IN_C, OUT_C = 8, 32, 16
    x = jax.random.normal(kx, (N, IN_C), jnp.float32)
    weight, bias = init_params(kp, IN_C, OUT_C)

    # Hoisted one-time weight prep (pad + transpose to [in,out] + bf16 cast).
    prep = prepare_params(weight, bias, use_bf16=True)
    y = jax.block_until_ready(mean2_linear(x, weight, bias, prepared=prep))
    assert y.shape == (N, OUT_C)

    # Reference with the same bf16 rounding of the inputs (f32 accumulation).
    xb = x.astype(jnp.bfloat16).astype(jnp.float32)
    wb = weight.astype(jnp.bfloat16).astype(jnp.float32)
    y_ref_bf16 = xb @ wb.T + bias
    assert jnp.allclose(y, y_ref_bf16, atol=1e-4, rtol=1e-4), \
        float(jnp.max(jnp.abs(y - y_ref_bf16)))

    # Full-precision sanity check (loose tol covers the bf16 MXU feed).
    y_ref_f32 = x @ weight.T + bias
    assert jnp.allclose(y, y_ref_f32, atol=2e-2, rtol=2e-2), \
        float(jnp.max(jnp.abs(y - y_ref_f32)))

    # f32-feed path (documented opt-in for parity-sensitive callers).
    y32 = jax.block_until_ready(mean2_linear(x, weight, bias, use_bf16=False))
    assert jnp.allclose(y32, y_ref_f32, atol=2e-2, rtol=2e-2), \
        float(jnp.max(jnp.abs(y32 - y_ref_f32)))

    print("KERNEL_OK")
</pallas_src>

<mosaic_0001>
module attributes {stable_mosaic.version = 11 : i64} {
  func.func @_linear_kernel_single_k(%arg0: i32, %arg1: i32, %arg2: memref<16x128xbf16, #tpu.memory_space<vmem>>, %arg3: memref<128x128xbf16, #tpu.memory_space<vmem>>, %arg4: memref<1x128xf32, #tpu.memory_space<vmem>>, %arg5: memref<16x128xf32, #tpu.memory_space<vmem>>) attributes {dimension_semantics = [#tpu.dimension_semantics<parallel>, #tpu.dimension_semantics<parallel>], iteration_bounds = array<i64: 1, 1>, scalar_prefetch = 0 : i64, scratch_operands = 0 : i64, tpu.core_type = #tpu.core_type<tc>, window_params = [{transform_indices = @transform_0, window_bounds = array<i64: 16, 128>}, {transform_indices = @transform_1, window_bounds = array<i64: 128, 128>}, {transform_indices = @transform_2, window_bounds = array<i64: 1, 128>}, {transform_indices = @transform_3, window_bounds = array<i64: 16, 128>}]} {
    %c0 = arith.constant 0 : index
    %c0_0 = arith.constant 0 : index
    %0 = vector.load %arg2[%c0, %c0_0] : memref<16x128xbf16, #tpu.memory_space<vmem>>, vector<16x128xbf16>
    %c0_1 = arith.constant 0 : index
    %c0_2 = arith.constant 0 : index
    %1 = vector.load %arg3[%c0_1, %c0_2] : memref<128x128xbf16, #tpu.memory_space<vmem>>, vector<128x128xbf16>
    %cst = arith.constant dense<0.000000e+00> : vector<16x128xf32>
    %2 = tpu.matmul %0, %1, %cst {dimension_numbers = #tpu.dot_dimension_numbers<[1], [0], [0], [1], [0, 0, 1, 1], [], []>} : vector<16x128xbf16>, vector<128x128xbf16>, vector<16x128xf32> -> vector<16x128xf32>
    %c0_3 = arith.constant 0 : index
    %c0_4 = arith.constant 0 : index
    %3 = vector.load %arg4[%c0_3, %c0_4] : memref<1x128xf32, #tpu.memory_space<vmem>>, vector<1x128xf32>
    %4 = vector.broadcast %3 : vector<1x128xf32> to vector<16x128xf32>
    %5 = arith.addf %2, %4 : vector<16x128xf32>
    %c0_5 = arith.constant 0 : index
    %c0_6 = arith.constant 0 : index
    %6 = vector.load %arg5[%c0_5, %c0_6] : memref<16x128xf32, #tpu.memory_space<vmem>>, vector<16x128xf32>
    tpu.vector_store %arg5[%c0_5, %c0_6], %5 {strides = array<i32>} : memref<16x128xf32, #tpu.memory_space<vmem>>, vector<16x128xf32>,
    return
  }
  func.func @transform_0(%arg0: i32, %arg1: i32) -> (i32, i32) {
    %c0_i32 = arith.constant 0 : i32
    %c0_i32_0 = arith.constant 0 : i32
    return %arg0, %c0_i32 : i32, i32
  }
  func.func @transform_1(%arg0: i32, %arg1: i32) -> (i32, i32) {
    %c0_i32 = arith.constant 0 : i32
    %c0_i32_0 = arith.constant 0 : i32
    return %c0_i32, %arg1 : i32, i32
  }
  func.func @transform_2(%arg0: i32, %arg1: i32) -> (i32, i32) {
    %c0_i32 = arith.constant 0 : i32
    %c0_i32_0 = arith.constant 0 : i32
    return %c0_i32, %arg1 : i32, i32
  }
  func.func @transform_3(%arg0: i32, %arg1: i32) -> (i32, i32) {
    %c0_i32 = arith.constant 0 : i32
    return %arg0, %arg1 : i32, i32
  }
}

</mosaic_0001>

<bundles_post_ra>
// kernel: tpu_custom_call.1
= control target key start
LH: loop header
LB: loop body
LE: loop exit
PB: predicated region body
PF: predicated region fallthrough
CT: control target
= control target key end

     0   :  { %8 = vsyncpa [#allocation3], 0  ;;  %s329_s0 = inlined_call_operand.hbm [shape: bf16[16,128], index: 0, kind: input, shape index: {}]   ;;  %s330_s1 = inlined_call_operand.hbm [shape: bf16[128,128], index: 1, kind: input, shape index: {}]   ;;  %s331_s2 = inlined_call_operand.vmem [shape: f32[1,128], index: 2, kind: input, shape index: {}]   ;;  %s332_s3 = inlined_call_operand.hbm [shape: f32[16,128], index: 3, kind: output, shape index: {}]  }
   0x1   :  { %9 = vsyncpa [#allocation6], 0 }
   0x2   :  { %10 = vsyncpa [#allocation4], 0  ;;  %s15_s14 = sshll.u32 %s329_s0, 4  ;;  %s290_s15 = smov [#allocation2]   ;;  %s16_s14 = int_to_ptr.hbm [resolvable:$true] %s15_s14 }
   0x3   :  { %s17_s16 = sshll.u32 %s290_s15, 4  ;;  %s28_s19 = sshll.u32 %s330_s1, 4  ;;  %s18_s16 = int_to_ptr.vmem [resolvable:$true] %s17_s16  ;;  %s29_s19 = int_to_ptr.hbm [resolvable:$true] %s28_s19 }
   0x4   :  { %s291_s20 = smov 64   ;;  %s292_s21 = smov 4  }
   0x5   :  { %23 = dma.hbm_to_vmem [thread:$0]  %s16_s14, 128, %s18_s16, [#allocation3], %s291_s20, %s291_s20, %s292_s21  }
   0x6   :  { %s293_s22 = smov [#allocation5]  }
   0x7   :  { %s30_s23 = sshll.u32 %s293_s22, 4  ;;  %s31_s23 = int_to_ptr.vmem [resolvable:$true] %s30_s23 }
   0x8   :  { %36 = dma.hbm_to_vmem [thread:$0]  %s29_s19, 1024, %s31_s23, [#allocation6], %s291_s20, %s291_s20, %s292_s21  }
   0x9   :  { %284 = dma.done.wait [#allocation3], 128  }
   0xa   :  { %285 = vsyncadd [#allocation3], 4294967168 }
   0xb   :  { %286 = dma.done.wait [#allocation6], 1024  }
   0xc   :  { %287 = vsyncadd [#allocation6], 4294966272  ;;  %v203_v0 = vld [vmem:[#allocation5 + $0x38] sm:$0xff]  ;;  %v202_v1 = vld [vmem:[#allocation5 + $0x30] sm:$0xff]  ;;  %s294_s24 = smov [#allocation7]   ;;  %s145_s28 = sshll.u32 %s332_s3, 4  ;;  %s146_s28 = int_to_ptr.hbm [resolvable:$true] %s145_s28 }
   0xd   :  { %123 = vmatpush.bf16.msra.mxu0 %v203_v0  ;;  %v201_v2 = vld [vmem:[#allocation5 + $0x28] sm:$0xff]  ;;  %v200_v3 = vld [vmem:[#allocation5 + $0x20] sm:$0xff]  ;;  %v199_v4 = vld [vmem:[#allocation5 + $0x18] sm:$0xff]  ;;  %s143_s25 = sshll.u32 %s294_s24, 4  ;;  %s295_s29 = smov 128   ;;  %s144_s25 = int_to_ptr.vmem [resolvable:$true] %s143_s25 }
   0xe   :  { %v198_v5 = vld [vmem:[#allocation5 + $0x10] sm:$0xff]  ;;  %v197_v6 = vld [vmem:[#allocation5 + $0x8] sm:$0xff]  ;;  %v196_v7 = vld [vmem:[#allocation5] sm:$0xff]  ;;  %s296_s30 = smov 8  }
   0xf   :  { %v195_v8 = vld [vmem:[#allocation2] sm:$0xff] }
  0x10   :  { %v211_v9 = vld [vmem:[%s331_s2] ss:$0 sm:$0xff] }
  0x11   :  { %124 = vmatpush.bf16.msra.mxu0 %v202_v1 }
  0x15   :  { %125 = vmatpush.bf16.msra.mxu0 %v201_v2 }
  0x19   :  { %126 = vmatpush.bf16.msra.mxu0 %v200_v3 }
  0x1d   :  { %127 = vmatpush.bf16.msra.mxu0 %v199_v4 }
  0x21   :  { %128 = vmatpush.bf16.msra.mxu0 %v198_v5 }
  0x25   :  { %129 = vmatpush.bf16.msra.mxu0 %v197_v6 }
  0x29   :  { %130 = vmatpush.bf16.msra.mxu0 %v196_v7 }
  0x2c   :  { %131 = vmatmul.bf16.vlgmr.msra.gmra.mxu0 %v195_v8 }
  0xa9   :  { %v132_v10 = vpop.f32.mrf.mxu0 }
  0xaa   :  { %v133_v11 = vadd.f32 %v211_v9, %v132_v10 }
  0xac   :  { %137 = vst [vmem:[#allocation7] sm:$0xff] %v133_v11 }
  0xb1   :  { %v134_v12 = vpop.f32.mrf.mxu0 }
  0xb2   :  { %v135_v13 = vadd.f32 %v211_v9, %v134_v12 }
  0xb4   :  { %138 = vst [vmem:[#allocation7 + $0x8] sm:$0xff] %v135_v13 }
  0xb5   :  { %151 = dma.vmem_to_hbm [thread:$0]  %s144_s25, 256, %s146_s28, [#allocation4], %s295_s29, %s295_s29, %s296_s30  }
  0xb6   :  { %288 = dma.done.wait [#allocation4], 256  }
  0xb7   :  { %289 = vsyncadd [#allocation4], 4294967040 }
  0xb8   :  { %156 = vsyncpa [#allocation3], 1 }
  0xb9   :  { %157 = vsyncpa [#allocation6], 1 }
  0xba   :  { %158 = vsyncpa [#allocation4], 1 }

</bundles_post_ra>
